<compile_context>
chip_gen: v7x
topology: tpu7x:2x2x1
jax: 0.10.0
libtpu: 0.0.40
codegen_flags: <defaults>
</compile_context>

<pallas_src>
import functools

import jax
import jax.numpy as jnp
from jax import lax
from jax.experimental import pallas as pl
from jax.experimental.pallas import tpu as pltpu


_VMEM_LIMIT = 48 * 1024 * 1024   # explicit scoped-VMEM cap with headroom (v7x has 64 MiB physical)


def _pick_tile(dim, candidates=(512, 256, 128)):
    """Largest candidate that exactly divides `dim`; otherwise use the full dim."""
    for t in candidates:
        if t <= dim and dim % t == 0:
            return t
    return dim


# ---------------------------------------------------------------------------
# Tiled matmul kernel (QKV projection)
# ---------------------------------------------------------------------------

def _matmul_kernel(x_ref, w_ref, o_ref, acc_ref):
    # grid = (M/tm, Nout/tn, K/tk); K axis is the reduction ("arbitrary").
    @pl.when(pl.program_id(2) == 0)
    def _():
        acc_ref[...] = jnp.zeros_like(acc_ref)

    acc_ref[...] += jnp.dot(x_ref[...], w_ref[...],
                            preferred_element_type=jnp.float32)

    @pl.when(pl.program_id(2) == pl.num_programs(2) - 1)
    def _():
        o_ref[...] = acc_ref[...].astype(o_ref.dtype)


def pallas_matmul(x2d, w):
    """x2d: (M, K), w: (K, Nout) -> (M, Nout). Tiled, pipelined, f32 accumulate."""
    M, K = x2d.shape
    K2, Nout = w.shape
    assert K == K2
    tm = _pick_tile(M)
    tn = _pick_tile(Nout)
    tk = _pick_tile(K)
    grid = (M // tm, Nout // tn, K // tk)
    return pl.pallas_call(
        _matmul_kernel,
        out_shape=jax.ShapeDtypeStruct((M, Nout), x2d.dtype),
        grid_spec=pltpu.PrefetchScalarGridSpec(
            num_scalar_prefetch=0,
            grid=grid,
            in_specs=[pl.BlockSpec((tm, tk), lambda i, j, k: (i, k)),
                      pl.BlockSpec((tk, tn), lambda i, j, k: (k, j))],
            out_specs=pl.BlockSpec((tm, tn), lambda i, j, k: (i, j)),
            scratch_shapes=[pltpu.VMEM((tm, tn), jnp.float32)]),
        compiler_params=pltpu.CompilerParams(
            dimension_semantics=("parallel", "parallel", "arbitrary"),
            vmem_limit_bytes=_VMEM_LIMIT),
    )(x2d, w)


# ---------------------------------------------------------------------------
# Fused multi-head attention + output projection kernel
# ---------------------------------------------------------------------------

def _fused_attention_kernel(qkv_ref, w_out_ref, b_out_ref, o_ref, *,
                            heads, dim_head, scale):
    # qkv_ref:   (1, N, 3*inner)   one batch element's fused q|k|v slab
    # w_out_ref: (inner, dim)      output projection weight (resident in VMEM)
    # b_out_ref: (1, dim)
    # o_ref:     (1, N, dim)       lane-dense final output block
    inner = heads * dim_head
    qkv = qkv_ref[0]                                   # (N, 3*inner), input dtype
    cdt = qkv.dtype

    head_outs = []
    for h in range(heads):                             # static unroll over heads
        lo = h * dim_head
        q = qkv[:, lo:lo + dim_head] * scale           # fold scale into q (one multiply)
        k = qkv[:, inner + lo:inner + lo + dim_head]
        v = qkv[:, 2 * inner + lo:2 * inner + lo + dim_head]

        # q @ k^T without an explicit transpose: contract the last axes.
        s = lax.dot_general(q, k, (((1,), (1,)), ((), ())),
                            preferred_element_type=jnp.float32)      # (N, N) f32
        m = jnp.max(s, axis=-1, keepdims=True)
        p = jnp.exp(s - m)
        denom = jnp.sum(p, axis=-1, keepdims=True)
        attn = (p * pl.reciprocal(denom, approx=True)).astype(cdt)   # EUP divide

        head_outs.append(jnp.dot(attn, v, preferred_element_type=jnp.float32))

    # Lane-dense (N, inner) slab in VMEM: no per-head masked stores, no HBM
    # round-trip, no post-attention transpose.
    out = jnp.concatenate(head_outs, axis=-1)

    # Fused output projection on the already-warm MXU (inner-wide contraction).
    y = jnp.dot(out.astype(w_out_ref.dtype), w_out_ref[...],
                preferred_element_type=jnp.float32)
    y = y + b_out_ref[...].astype(jnp.float32)
    o_ref[0] = y.astype(o_ref.dtype)


def pallas_fused_attention(qkv, w_out, b_out, *, heads, dim_head, scale,
                           out_dtype):
    """qkv: (B, N, 3*inner); w_out: (inner, dim); b_out: (1, dim) -> (B, N, dim)."""
    B, N, three_inner = qkv.shape
    inner = heads * dim_head
    assert three_inner == 3 * inner
    dim = w_out.shape[1]
    kern = functools.partial(_fused_attention_kernel, heads=heads,
                             dim_head=dim_head, scale=scale)
    return pl.pallas_call(
        kern,
        out_shape=jax.ShapeDtypeStruct((B, N, dim), out_dtype),
        grid=(B,),
        in_specs=[pl.BlockSpec((1, N, 3 * inner), lambda b: (b, 0, 0)),
                  pl.BlockSpec((inner, dim), lambda b: (0, 0)),
                  pl.BlockSpec((1, dim), lambda b: (0, 0))],
        out_specs=pl.BlockSpec((1, N, dim), lambda b: (b, 0, 0)),
        compiler_params=pltpu.CompilerParams(
            dimension_semantics=("parallel",),
            vmem_limit_bytes=_VMEM_LIMIT),
    )(qkv, w_out, b_out)


# ---------------------------------------------------------------------------
# Full module forward
# ---------------------------------------------------------------------------

def attention_forward(x, params, *, heads, dim_head):
    """x: (B, N, D) -> (B, N, D)."""
    B, N, D = x.shape
    inner = heads * dim_head
    scale = dim_head ** (-0.5)

    # --- to_qkv (Linear, no bias), tiled/pipelined ---
    x2d = x.reshape(B * N, D)
    qkv = pallas_matmul(x2d, params["w_qkv"])          # (B*N, 3*inner)
    qkv = qkv.reshape(B, N, 3 * inner)                 # free reshape, no transpose

    # --- fused attention core + to_out (Dropout(0.0) == identity) ---
    project_out = not (heads == 1 and dim_head == D)
    if project_out:
        w_out, b_out = params["w_out"], params["b_out"]
    else:
        # to_out == nn.Identity(): fold an exact identity projection in.
        w_out = jnp.eye(inner, dtype=x.dtype)
        b_out = jnp.zeros((1, inner), dtype=x.dtype)

    return pallas_fused_attention(qkv, w_out, b_out, heads=heads,
                                  dim_head=dim_head, scale=scale,
                                  out_dtype=x.dtype)


# ---------------------------------------------------------------------------
# Deterministic parameter init (matches nn.Linear shapes, stored transposed)
# ---------------------------------------------------------------------------

def init_params(key, dim, heads, dim_head):
    inner_dim = heads * dim_head
    k1, k2, k3 = jax.random.split(key, 3)
    # torch stores Linear weight as (out, in); we store (in, out) so y = x @ w (+ b).
    w_qkv = jax.random.normal(k1, (dim, inner_dim * 3), jnp.float32) * 0.1
    w_out = jax.random.normal(k2, (inner_dim, dim), jnp.float32) * 0.1
    b_out = jax.random.normal(k3, (1, dim), jnp.float32) * 0.1
    return {"w_qkv": w_qkv, "w_out": w_out, "b_out": b_out}


# ---------------------------------------------------------------------------
# Reference (pure JAX) for sanity check
# ---------------------------------------------------------------------------

def reference_forward(x, params, *, heads, dim_head):
    B, N, D = x.shape
    scale = dim_head ** (-0.5)
    qkv = x @ params["w_qkv"]
    qkv = qkv.reshape(B, N, 3, heads, dim_head)
    q, k, v = (jnp.transpose(qkv[:, :, i], (0, 2, 1, 3)) for i in range(3))
    dots = jnp.einsum("bhqd,bhkd->bhqk", q, k) * scale
    attn = jax.nn.softmax(dots, axis=-1)
    out = jnp.einsum("bhqk,bhkd->bhqd", attn, v)
    out = jnp.transpose(out, (0, 2, 1, 3)).reshape(B, N, heads * dim_head)
    return out @ params["w_out"] + params["b_out"][0]


# ---------------------------------------------------------------------------

if __name__ == "__main__":
    B, N, DIM = 2, 8, 64
    HEADS, DIM_HEAD = 4, 32            # inner_dim = 128, project_out=True

    key = jax.random.PRNGKey(0)
    kx, kp = jax.random.split(key)
    x = jax.random.normal(kx, (B, N, DIM), jnp.float32)
    params = init_params(kp, DIM, HEADS, DIM_HEAD)

    y = attention_forward(x, params, heads=HEADS, dim_head=DIM_HEAD)
    y = jax.block_until_ready(y)

    y_ref = reference_forward(x, params, heads=HEADS, dim_head=DIM_HEAD)
    assert y.shape == (B, N, DIM)
    # approx reciprocal in the softmax slightly loosens tolerance vs exact ref.
    assert jnp.allclose(y, y_ref, atol=2e-3, rtol=2e-3), "mismatch vs reference"

    print("KERNEL_OK")
</pallas_src>

<mosaic_0001>
module attributes {stable_mosaic.version = 11 : i64} {
  func.func @_matmul_kernel(%arg0: i32, %arg1: i32, %arg2: i32, %arg3: memref<16x64xf32, #tpu.memory_space<vmem>>, %arg4: memref<64x128xf32, #tpu.memory_space<vmem>>, %arg5: memref<16x128xf32, #tpu.memory_space<vmem>>, %arg6: memref<16x128xf32, #tpu.memory_space<vmem>>) attributes {dimension_semantics = [#tpu.dimension_semantics<parallel>, #tpu.dimension_semantics<parallel>, #tpu.dimension_semantics<arbitrary>], iteration_bounds = array<i64: 1, 3, 1>, scalar_prefetch = 0 : i64, scratch_operands = 1 : i64, tpu.core_type = #tpu.core_type<tc>, window_params = [{transform_indices = @transform_0, window_bounds = array<i64: 16, 64>}, {transform_indices = @transform_1, window_bounds = array<i64: 64, 128>}, {transform_indices = @transform_2, window_bounds = array<i64: 16, 128>}]} {
    %c0_i32 = arith.constant 0 : i32
    %0 = arith.cmpi eq, %arg2, %c0_i32 : i32
    %1 = arith.extui %0 : i1 to i32
    %c0_i32_0 = arith.constant 0 : i32
    %2 = arith.cmpi ne, %1, %c0_i32_0 : i32
    scf.if %2 {
      %cst_10 = arith.constant 0.000000e+00 : f32
      %12 = vector.broadcast %cst_10 : f32 to vector<16x128xf32>
      %c0_11 = arith.constant 0 : index
      %c0_12 = arith.constant 0 : index
      %13 = vector.load %arg6[%c0_11, %c0_12] : memref<16x128xf32, #tpu.memory_space<vmem>>, vector<16x128xf32>
      tpu.vector_store %arg6[%c0_11, %c0_12], %12 {strides = array<i32>} : memref<16x128xf32, #tpu.memory_space<vmem>>, vector<16x128xf32>,
    } else {
    }
    %c0 = arith.constant 0 : index
    %c0_1 = arith.constant 0 : index
    %3 = vector.load %arg6[%c0, %c0_1] : memref<16x128xf32, #tpu.memory_space<vmem>>, vector<16x128xf32>
    %c0_2 = arith.constant 0 : index
    %c0_3 = arith.constant 0 : index
    %4 = vector.load %arg3[%c0_2, %c0_3] : memref<16x64xf32, #tpu.memory_space<vmem>>, vector<16x64xf32>
    %c0_4 = arith.constant 0 : index
    %c0_5 = arith.constant 0 : index
    %5 = vector.load %arg4[%c0_4, %c0_5] : memref<64x128xf32, #tpu.memory_space<vmem>>, vector<64x128xf32>
    %cst = arith.constant dense<0.000000e+00> : vector<16x128xf32>
    %6 = tpu.matmul %4, %5, %cst {dimension_numbers = #tpu.dot_dimension_numbers<[1], [0], [0], [1], [0, 0, 1, 1], [], []>} : vector<16x64xf32>, vector<64x128xf32>, vector<16x128xf32> -> vector<16x128xf32>
    %7 = arith.addf %3, %6 : vector<16x128xf32>
    %c0_6 = arith.constant 0 : index
    %c0_7 = arith.constant 0 : index
    %8 = vector.load %arg6[%c0_6, %c0_7] : memref<16x128xf32, #tpu.memory_space<vmem>>, vector<16x128xf32>
    tpu.vector_store %arg6[%c0_6, %c0_7], %7 {strides = array<i32>} : memref<16x128xf32, #tpu.memory_space<vmem>>, vector<16x128xf32>,
    %c0_i32_8 = arith.constant 0 : i32
    %9 = arith.cmpi eq, %arg2, %c0_i32_8 : i32
    %10 = arith.extui %9 : i1 to i32
    %c0_i32_9 = arith.constant 0 : i32
    %11 = arith.cmpi ne, %10, %c0_i32_9 : i32
    scf.if %11 {
      %c0_10 = arith.constant 0 : index
      %c0_11 = arith.constant 0 : index
      %12 = vector.load %arg6[%c0_10, %c0_11] : memref<16x128xf32, #tpu.memory_space<vmem>>, vector<16x128xf32>
      %c0_12 = arith.constant 0 : index
      %c0_13 = arith.constant 0 : index
      %13 = vector.load %arg5[%c0_12, %c0_13] : memref<16x128xf32, #tpu.memory_space<vmem>>, vector<16x128xf32>
      tpu.vector_store %arg5[%c0_12, %c0_13], %12 {strides = array<i32>} : memref<16x128xf32, #tpu.memory_space<vmem>>, vector<16x128xf32>,
    } else {
    }
    return
  }
  func.func @transform_0(%arg0: i32, %arg1: i32, %arg2: i32) -> (i32, i32) {
    %c0_i32 = arith.constant 0 : i32
    return %arg0, %arg2 : i32, i32
  }
  func.func @transform_1(%arg0: i32, %arg1: i32, %arg2: i32) -> (i32, i32) {
    %c0_i32 = arith.constant 0 : i32
    return %arg2, %arg1 : i32, i32
  }
  func.func @transform_2(%arg0: i32, %arg1: i32, %arg2: i32) -> (i32, i32) {
    %c0_i32 = arith.constant 0 : i32
    return %arg0, %arg1 : i32, i32
  }
}

</mosaic_0001>

<bundles_post_ra>
// kernel: tpu_custom_call.1
= control target key start
LH: loop header
LB: loop body
LE: loop exit
PB: predicated region body
PF: predicated region fallthrough
CT: control target
= control target key end

     0   :  { %7 = vsyncpa [#allocation4], 0  ;;  %s977_s0 = inlined_call_operand.hbm [shape: f32[16,64], index: 0, kind: input, shape index: {}]   ;;  %s978_s1 = inlined_call_operand.hbm [shape: f32[64,384], index: 1, kind: input, shape index: {}]   ;;  %s979_s2 = inlined_call_operand.hbm [shape: f32[16,384], index: 2, kind: output, shape index: {}]  }
   0x1   :  { %8 = vsyncpa [#allocation7], 0 }
   0x2   :  { %10 = vsyncpa [#allocation7 + $0x1], 0 }
   0x3   :  { %11 = vsyncpa [#allocation5], 0 }
   0x4   :  { %13 = vsyncpa [#allocation5 + $0x1], 0  ;;  %s758_s9 = smov 0   ;;  %s760_s10 = smov 0  }
   0x5   :  { %s762_s11 = smov 0   ;;  %s764_s12 = smov 0  }
   0x6   :  { %s766_s13 = smov 0   ;;  %s768_s14 = smov 0  }
   0x7 LB: > { %s447_s15 = sadd.s32 4294967295, %s732_s14   ;;  %s448_s16 = sadd.s32 4294967294, %s732_s14   ;;  %s732_s14 = sphi %s768_s14, %s19_s14   ;;  %s728_s13 = sphi %s766_s13, %s1004_s13   ;;  %s724_s12 = sphi %s764_s12, %s1003_s12   ;;  %s720_s11 = sphi %s762_s11, %s1002_s11   ;;  %s716_s10 = sphi %s760_s10, %s1001_s10   ;;  %s712_s9 = sphi %s758_s9, %s1000_s9  }
   0x8   : > { %p82_p0 = scmp.ne.s32.totalorder %s720_s11, %s716_s10  ;;  %p83_p1 = scmp.eq.s32.totalorder %s732_s14, 0 }
   0x9   : > { %p88_p2 = scmp.ne.s32.totalorder %s716_s10, %s712_s9  ;;  %p795_p3 = scmp.eq.s32.totalorder %s447_s15, 0 }
   0xa   : > { %p799_p4 = por %p83_p1, %p82_p0  ;;  %p114_p5 = scmp.eq.s32.totalorder %s447_s15, 2 }
   0xb   : > { %s986_s17 = scalar_select %p795_p3, 1, 0 }
   0xc   : > { %p805_p6 = por %p795_p3, %p88_p2  ;;  %p120_p7 = scmp.eq.s32.totalorder %s448_s16, 2 }
   0xd   : > { %p809_p8 = por %p114_p5, %p82_p0  ;;  %p449_p9 = scmp.ge.s32.totalorder %s732_s14, 1 }
   0xe   : > { %s988_s19 = scalar_select %p805_p6, 1, 0 }
   0xf   : > { %s989_s20 = scalar_select %p809_p8, 1, 0 }
  0x10   : > { %p814_p10 = por %p120_p7, %p88_p2  ;;  %p127_p11 = scmp.lt.s32.totalorder %s732_s14, 4 }
  0x11   : > { %s734_s23 = smov [#allocation3]   ;;  %p530_p0 = scmp.lt.s32.totalorder %s732_s14, 3 }
  0x12   : > { %s990_s21 = scalar_select %p814_p10, 1, 0 }
  0x13   : > { %p819_p12 = pnand %p449_p9, %p127_p11  ;;  %s143_s24 = sshll.u32 %s734_s23, 4  ;;  %s144_s24 = int_to_ptr.vmem [resolvable:$true] %s143_s24 }
  0x14   : > { %p834_p2 = pnand %p530_p0, %p799_p4  ;;  %s34_s27 = sadd.s32 1, %s728_s13 }
  0x15   : > { %s991_s22 = scalar_select %p819_p12, 1, 0 }
  0x16   : > { %p517_p13 = pneg %p819_p12  ;;  %s588_s30 = scalar_lea.hbm %s977_s0, 256 }
  0x17   : > { %s993_s26 = scalar_select %p834_p2, 1, 0 }
  0x18   : > { %p828_p1 = pnand %p517_p13, %p795_p3  ;;  %p589_p5 = scmp.ne.s32.totalorder %s977_s0, %s588_s30 }
  0x19   : > { %p595_p4 = scmp.lt.u32.totalorder %s588_s30, %s977_s0 }
  0x1a   : > { %p590_p7 = pneg %p828_p1 }
  0x1c   : > { %p591_p9 = pnand %p590_p7, %p589_p5 }
  0x1e   : > { %p592_p11 = pneg %p591_p9 }
  0x20   : > { %p597_p13 = pnand %p595_p4, %p592_p11 }
  0x22   : > { %600 = shalt.err (!%p597_p13)
}
  0x23   : > { %s601_s7 = scalar_lea.vmem %s144_s24, 256  ;;  %p609_p6 = scmp.lt.s32.totalorder %s144_s24, %s144_s24 }
  0x24   : > { %p602_p0 = scmp.ne.s32.totalorder %s144_s24, %s601_s7  ;;  %p610_p3 = scmp.lt.s32.totalorder %s601_s7, %s601_s7 }
  0x26   : > { %p604_p10 = pnand %p602_p0, %p590_p7  ;;  %p611_p12 = por %p610_p3, %p609_p6 }
  0x28   : > { %p605_p8 = pneg %p604_p10 }
  0x2a   : > { %p612_p2 = pnand %p611_p12, %p605_p8 }
  0x2c   : > { %615 = shalt.err (!%p612_p2)
}
  0x2d   : > { %s735_s8 = smov 128   ;;  %s736_s15 = smov 8  }
  0x2e   : > { %520 = dma.hbm_to_vmem [thread:$0]  (!%p828_p1), %s977_s0, 256, %s144_s24, [#allocation4], %s735_s8, %s735_s8, %s736_s15  }
  0x2f   : > { %p36_p10 = scmp.ge.s32.totalorder %s34_s27, 3  ;;  %s75_s23 = sadd.s32 1, %s720_s11 }
  0x30   : > { %s157_s28 = sand.u32 1, %s720_s11   ;;  %s453_s3 = sshll.u32 %s728_s13, 7 }
  0x31   : > { %s1006_s27 = smov (%p36_p10, %s34_s27), 0  ;;  %s452_s29 = sshll.u32 %s157_s28, 6 }
  0x32   : > { %s71_s30 = ssub.s32 %s728_s13, %s1006_s27  ;;  %s868_s5 = scalar_lea.hbm %s978_s1, %s453_s3 }
  0x33   : > { %p73_p3 = scmp.eq.s32.totalorder %s71_s30, 0  ;;  %s161_s24 = scalar_lea.vmem [#allocation6], %s452_s29 }
  0x34   : > { %s170_s6 = sshll.u32 %s161_s24, 4  ;;  %s875_s16 = scalar_lea.sflag [#allocation7], %s157_s28  ;;  %s873_s6 = int_to_ptr.vmem [resolvable:$true] %s170_s6 }
  0x35   : > { %s871_s7 = scalar_select %p73_p3, %s720_s11, %s75_s23  }
  0x36   : > { %s616_s18 = scalar_lea.hbm %s868_s5, 1024  ;;  %p994_p8 = scmp.ne.s32.totalorder %s993_s26, 0 }
  0x37   : > { %p617_p6 = scmp.ne.s32.totalorder %s868_s5, %s616_s18  ;;  %s621_s25 = scalar_lea.hbm %s978_s1, 3072 }
  0x38   : > { %p618_p12 = pneg %p994_p8  ;;  %p622_p5 = scmp.lt.u32.totalorder %s868_s5, %s978_s1 }
  0x39   : > { %p623_p7 = scmp.lt.u32.totalorder %s621_s25, %s616_s18  ;;  %p625_p11 = scmp.lt.u32.totalorder %s616_s18, %s868_s5 }
  0x3a   : > { %p619_p1 = pnand %p618_p12, %p617_p6 }
  0x3b   : > { %p624_p9 = por %p623_p7, %p622_p5 }
  0x3c   : > { %p620_p2 = pneg %p619_p1 }
  0x3d   : > { %p626_p4 = por %p625_p11, %p624_p9 }
  0x3f   : > { %p627_p13 = pnand %p626_p4, %p620_p2 }
  0x41   : > { %630 = shalt.err (!%p627_p13)
}
  0x42   : > { %s631_s23 = scalar_lea.vmem %s873_s6, 1024  ;;  %s737_s28 = smov [#allocation6]  }
  0x43   : > { %p632_p0 = scmp.ne.s32.totalorder %s873_s6, %s631_s23  ;;  %s636_s24 = sshll.u32 %s737_s28, 4  ;;  %s637_s24 = int_to_ptr.vmem [resolvable:$false] %s636_s24 }
  0x44   : > { %s638_s30 = scalar_lea.vmem %s637_s24, 2048  ;;  %p639_p6 = scmp.lt.s32.totalorder %s873_s6, %s637_s24 }
  0x45   : > { %p634_p10 = pnand %p632_p0, %p618_p12  ;;  %p640_p1 = scmp.lt.s32.totalorder %s638_s30, %s631_s23 }
  0x47   : > { %p635_p3 = pneg %p634_p10  ;;  %p641_p5 = por %p640_p1, %p639_p6 }
  0x49   : > { %p642_p7 = pnand %p641_p5, %p635_p3 }
  0x4b   : > { %645 = shalt.err (!%p642_p7)
}
  0x4c   : > { %s738_s18 = smov 384   ;;  %p995_p12 = scmp.ne.s32.totalorder %s991_s22, 0 }
  0x4d   : > { %524 = dma.hbm_to_vmem [thread:$0]  (!%p994_p8), %s868_s5, 1024, %s873_s6, %s875_s16, %s738_s18, %s735_s8, %s736_s15  }
  0x4e   : > { %182 = sbr.rel (%p995_p12) target bundleno = 338 (0x152), region = 28  ;;  %p996_p2 = scmp.ne.s32.totalorder (!%p995_p12), %s986_s17, 0 }
  0x55   : > { %699 = dma.done.wait (%p996_p2), [#allocation4], 256  }
  0x56   : > { %701 = vsyncadd (%p996_p2), [#allocation4], 4294967040  ;;  %s912_s3 = sand.u32 1, %s716_s10   ;;  %p997_p9 = scmp.ne.s32.totalorder %s988_s19, 0 }
  0x57   : > { %s456_s26 = sshll.u32 %s912_s3, 6  ;;  %s189_s25 = scalar_lea.sflag [#allocation7], %s912_s3 }
  0x58   : > { %s192_s29 = scalar_lea.vmem [#allocation6], %s456_s26 }
  0x59   : > { %703 = dma.done.wait (%p997_p9), %s189_s25, 1024  }
  0x5a   : > { %705 = vsyncadd (%p997_p9), %s189_s25, 4294966272  ;;  %v226_v0 = vld [vmem:[%s192_s29] sm:$0xff]  ;;  %v227_v1 = vld [vmem:[%s192_s29 + $0x8] sm:$0xff]  ;;  %vm234_vm0 = vcmask 523264   ;;  %s457_s17 = sshll.u32 %s912_s3, 4  ;;  %s461_s8 = sshll.u32 %s724_s12, 7 }
  0x5b   : > { %v228_v2 = vld [vmem:[%s192_s29 + $0x10] sm:$0xff]  ;;  %v493_v3 = vpack.c.bf16 %v227_v1, %v226_v0  ;;  %v229_v4 = vld [vmem:[%s192_s29 + $0x18] sm:$0xff]  ;;  %v230_v6 = vld [vmem:[%s192_s29 + $0x20] sm:$0xff]  ;;  %s212_s19 = scalar_lea.vmem [#allocation8], %s457_s17  ;;  %s929_s6 = scalar_lea.hbm %s979_s2, %s461_s8 }
  0x5c   : > { %v497_v5 = vpack.c.bf16 %v229_v4, %v228_v2  ;;  %v231_v7 = vld [vmem:[%s192_s29 + $0x28] sm:$0xff]  ;;  %v224_v8 = vld [vmem:[#allocation3] sm:$0xff]  ;;  %v233_v11 = vld [vmem:[%s192_s29 + $0x38] sm:$0xff]  ;;  %s343_s22 = sshll.u32 %s212_s19, 4  ;;  %s328_s16 = scalar_lea.sflag [#allocation5], %s912_s3  ;;  %s924_s22 = int_to_ptr.vmem [resolvable:$true] %s343_s22 }
  0x5d   : > { %494 = vmatprep.subr.bf16.mxu0 %v493_v3  ;;  %490 = vmatprep.mubr.msk.f32.mxu0 %vm234_vm0, %v224_v8  ;;  %v501_v9 = vpack.c.bf16 %v231_v7, %v230_v6  ;;  %v232_v10 = vld [vmem:[%s192_s29 + $0x30] sm:$0xff]  ;;  %v225_v13 = vld [vmem:[#allocation3 + $0x8] sm:$0xff]  ;;  %s646_s4 = scalar_lea.vmem %s924_s22, 256  ;;  %p998_p11 = scmp.ne.s32.totalorder %s989_s20, 0 }
  0x5e   : > { %496 = vmatpush3.bf16.msra.mxu0 %v493_v3  ;;  %v505_v12 = vpack.c.bf16 %v233_v11, %v232_v10  ;;  %p647_p8 = scmp.ne.s32.totalorder %s924_s22, %s646_s4  ;;  %s739_s12 = smov [#allocation8]  }
  0x5f   : > { %498 = vmatprep.subr.bf16.mxu0 %v497_v5  ;;  %s650_s23 = sshll.u32 %s739_s12, 4  ;;  %s651_s23 = int_to_ptr.vmem [resolvable:$false] %s650_s23 }
  0x60   : > { %p648_p4 = pnand %p647_p8, %p998_p11  ;;  %s652_s28 = scalar_lea.vmem %s651_s23, 512 }
  0x61   : > { %p653_p0 = scmp.lt.s32.totalorder %s924_s22, %s651_s23  ;;  %p654_p10 = scmp.lt.s32.totalorder %s652_s28, %s646_s4 }
  0x62   : > { %500 = vmatpush3.bf16.msra.mxu0 %v497_v5  ;;  %p649_p13 = pneg %p648_p4 }
  0x63   : > { %502 = vmatprep.subr.bf16.mxu0 %v501_v9  ;;  %p655_p3 = por %p654_p10, %p653_p0 }
  0x65   : > { %p656_p6 = pnand %p655_p3, %p649_p13 }
  0x66   : > { %504 = vmatpush3.bf16.msra.mxu0 %v501_v9 }
  0x67   : > { %506 = vmatprep.subr.bf16.mxu0 %v505_v12 }
  0x6a   : > { %508 = vmatpush3.bf16.msra.mxu0 %v505_v12 }
  0x6d   : > { %491 = vmatmul.mubr.msk.f32.vlgmr.msra.gmra.mrb[0].mxu0 %vm234_vm0, %v225_v13 }
 0x140   : > { %v492_v14 = vpop.f32.mrb[0].mxu0 }
 0x141   : > { %326 = vst [vmem:[%s212_s19 + $0x8] sm:$0xff] %v492_v14  ;;  %v307_v15 = vpop.f32.mrb[1].mxu0 }
 0x142   : > { %325 = vst [vmem:[%s212_s19] sm:$0xff] %v307_v15 }
 0x143   : > { %659 = shalt.err (!%p656_p6)
}
 0x144   : > { %s660_s24 = scalar_lea.hbm %s929_s6, 256  ;;  %s664_s26 = scalar_lea.hbm %s979_s2, 768 }
 0x145   : > { %p661_p1 = scmp.ne.s32.totalorder %s929_s6, %s660_s24  ;;  %p665_p12 = scmp.lt.u32.totalorder %s929_s6, %s979_s2 }
 0x146   : > { %p666_p2 = scmp.lt.u32.totalorder %s664_s26, %s660_s24  ;;  %p668_p8 = scmp.lt.u32.totalorder %s660_s24, %s929_s6 }
 0x147   : > { %p662_p5 = pnand %p661_p1, %p998_p11 }
 0x148   : > { %p667_p9 = por %p666_p2, %p665_p12 }
 0x149   : > { %p663_p7 = pneg %p662_p5 }
 0x14a   : > { %p669_p4 = por %p668_p8, %p667_p9 }
 0x14c   : > { %p670_p13 = pnand %p669_p4, %p663_p7 }
 0x14e   : > { %673 = shalt.err (!%p670_p13)
}
 0x14f   : > { %s740_s17 = smov 128   ;;  %s741_s19 = smov 384  }
 0x150   : > { %s742_s8 = smov 8  }
 0x151   : > { %515 = dma.vmem_to_hbm [thread:$0]  (%p998_p11), %s924_s22, 256, %s929_s6, %s328_s16, %s740_s17, %s741_s19, %s742_s8  }
 0x152 PF: > { %p532_p0 = scmp.ge.s32.totalorder %s732_s14, 2  ;;  %s358_s15 = sand.u32 1, %s712_s9  }
 0x153   : > { %p999_p10 = scmp.ne.s32.totalorder %s990_s21, 0  ;;  %s359_s5 = scalar_lea.sflag [#allocation5], %s358_s15 }
 0x155   : > { %p526_p3 = pnand %p532_p0, %p999_p10 }
 0x157   : > { %707 = dma.done.wait (!%p526_p3), %s359_s5, 256  }
 0x158   : > { %709 = vsyncadd (!%p526_p3), %s359_s5, 4294967040  ;;  %s19_s14 = sadd.s32 1, %s732_s14   ;;  %s1000_s9 = smov %s716_s10 }
 0x159   : > { %p16_p6 = scmp.ge.s32.totalorder %s19_s14, 5   ;;  %s1001_s10 = smov %s720_s11 }
 0x15a   : > { %s1002_s11 = smov %s871_s7  ;;  %s1003_s12 = smov %s728_s13 }
 0x15b   : > { %s1004_s13 = smov %s1006_s27  ;;  %18 = sbr.rel (!%p16_p6) target bundleno = 7 (0x7), region = 87 }
 0x162   :  { %364 = vsyncpa [#allocation4], 1 }
 0x163   :  { %366 = vsyncpa [#allocation4 + $0x1], 1 }
 0x164   :  { %367 = vsyncpa [#allocation7], 1 }
 0x165   :  { %369 = vsyncpa [#allocation7 + $0x1], 1 }
 0x166   :  { %370 = vsyncpa [#allocation5], 1 }
 0x167   :  { %372 = vsyncpa [#allocation5 + $0x1], 1 }

</bundles_post_ra>
